<compile_context>
chip_gen: v5e
topology: v5e:2x2
jax: 0.10.0
libtpu: 0.0.40
codegen_flags: <defaults>
</compile_context>

<pallas_src>
import jax
import jax.numpy as jnp
import numpy as np
from jax import lax
from jax.experimental import pallas as pl
from jax.experimental.pallas import tpu as pltpu

_NEG_BIG = -1e30  # finite "minus infinity" for masked softmax logits


def _bf16_exp_ok():
    """bf16 EUP (exp) exists on v6e/v7x; keep f32 exp on v5e and older."""
    try:
        kind = jax.devices()[0].device_kind.lower()
    except Exception:
        return False
    return not any(tag in kind for tag in ("v2", "v3", "v4", "v5"))


def _make_tad_kernel(C, C8, N_valid, N_pad, TQ, use_bf16_exp):
    R = 2 * C8 + C + 2          # packed projection rows: [q; k; v; gate; mask]
    need_mask = N_valid != N_pad

    def kernel(gamma_ref, x_hbm, w_ref, b_ref,        # inputs
               out_ref, tissue_ref,                   # outputs
               x_s, q_s, k_s, v_s, gate_s, anat_s,    # VMEM scratch
               dma_sem):                              # DMA semaphore
        f32 = jnp.float32
        bf16 = jnp.bfloat16
        b = pl.program_id(0)
        qi = pl.program_id(1)

        # ---- per-batch-element projections, cached for all query tiles ------
        @pl.when(qi == 0)
        def _():
            # Land the full (C, N_pad) f32 slab once per batch element.  It is
            # single-buffered: one exposed DMA per batch trades against n_qt
            # compute steps and frees C*N_pad*4 bytes of VMEM vs. the previous
            # double-buffered full-x input block.
            cp = pltpu.make_async_copy(x_hbm.at[b], x_s, dma_sem)
            cp.start()
            cp.wait()

            x = x_s[...]                                               # (C, N_pad)
            # bf16 MXU operands, f32 accumulation.
            proj = jnp.dot(w_ref[...].astype(bf16), x.astype(bf16),
                           preferred_element_type=f32) + b_ref[...]    # (R, N_pad)
            q = proj[0:C8]
            k = proj[C8:2 * C8]
            v = proj[2 * C8:2 * C8 + C]
            g = proj[2 * C8 + C:2 * C8 + C + 1]
            m = proj[2 * C8 + C + 1:R]

            if need_mask:
                col_valid = lax.broadcasted_iota(jnp.int32, (1, N_pad), 1) < N_valid

            inv_n = jnp.float32(1.0 / N_valid)
            if need_mask:
                q_sum = jnp.sum(jnp.where(col_valid, q, 0.0), axis=1, keepdims=True)
                k_sum = jnp.sum(jnp.where(col_valid, k, 0.0), axis=1, keepdims=True)
            else:
                q_sum = jnp.sum(q, axis=1, keepdims=True)
                k_sum = jnp.sum(k, axis=1, keepdims=True)
            q = q - q_sum * inv_n
            k = k - k_sum * inv_n

            v = jnp.maximum(v, 0.0)                   # relu
            if need_mask:                             # zero padded key columns so
                v = jnp.where(col_valid, v, 0.0)      # pads never reach tissue/anatomy

            gate = jax.nn.sigmoid(g)                  # BN(1) folded into w/b already

            # mask softmax + anatomy (VPU reduction, not a 1-wide matmul)
            if need_mask:
                m = jnp.where(col_valid, m, _NEG_BIG)
            mp = jnp.exp(m - jnp.max(m, axis=1, keepdims=True))        # (1, N_pad)
            anat = jnp.sum(v * mp, axis=1, keepdims=True) * pl.reciprocal(
                jnp.sum(mp, axis=1, keepdims=True), approx=True)       # (C, 1)

            q_s[...] = q.astype(bf16)
            k_s[...] = k.astype(bf16)
            # Row C of v_s is the softmax-denominator row: ones at valid key
            # columns, zeros at pads.  With v also zeroed at pads, the padded
            # columns contribute exactly 0 to numerator and denominator, so no
            # per-tile mask of the energy slab is needed.
            v_s[0:C, :] = v.astype(bf16)
            if need_mask:
                ones_row = jnp.where(col_valid, 1.0, 0.0)
            else:
                ones_row = jnp.ones((1, N_pad), f32)
            v_s[C:C + 1, :] = ones_row.astype(bf16)
            gate_s[...] = gate
            anat_s[...] = gamma_ref[0] * anat         # fold gamma once per batch

        # ---- query-tiled attention ------------------------------------------
        qs = pl.multiple_of(qi * TQ, TQ)
        q_t = q_s[:, pl.ds(qs, TQ)]                                    # (C8, TQ) bf16

        # energy[m, j] = sum_d q[d, qs+m] * k[d, j]
        energy = lax.dot_general(q_t, k_s[...], (((0,), (0,)), ((), ())),
                                 preferred_element_type=f32)           # (TQ, N_pad)
        row_max = jnp.max(energy, axis=-1, keepdims=True)
        if use_bf16_exp:
            p = jnp.exp((energy - row_max).astype(bf16))               # bf16 EUP path
        else:
            p = jnp.exp(energy - row_max).astype(bf16)                 # f32 exp (v5e)

        # [v; valid] @ p^T : rows 0..C-1 = unnormalized tissue, row C = denom
        res = lax.dot_general(v_s[...], p, (((1,), (1,)), ((), ())),
                              preferred_element_type=f32)              # (C+1, TQ)
        num = res[0:C]                                                 # (C, TQ)
        denom = res[C:C + 1]                                           # (1, TQ)

        gate_t = gate_s[:, pl.ds(qs, TQ)]                              # (1, TQ)
        scale = gate_t * pl.reciprocal(denom, approx=True)             # (1, TQ)
        tissue_t = num * scale                                         # (C, TQ)

        x_t = x_s[:, pl.ds(qs, TQ)]                                    # (C, TQ) f32
        out_ref[0] = gamma_ref[0] * tissue_t + anat_s[...] + x_t
        tissue_ref[0] = tissue_t

    return kernel


def _round_up(x, m):
    return (x + m - 1) // m * m


def _vmem_bytes_est(C, C8, N_pad, TQ, R):
    return int(
        C * N_pad * 4                        # f32 x slab (single-buffered scratch)
        + 2 * 2 * C * TQ * 4                 # out + tissue blocks (double-buffered)
        + 2 * (R * C + R) * 4                # packed W + bias blocks (double-buffered)
        + (2 * C8 + C + 1) * N_pad * 2       # bf16 q / k / [v; denom-row] scratch
        + N_pad * 4 + C * 4                  # gate + gamma*anatomy scratch
        + 3 * TQ * N_pad * 4                 # energy / exp / p temporaries
        + 3 * R * N_pad * 4                  # projection-phase temporaries
    )


def _vmem_capacity_bytes():
    # Physical per-core VMEM; conservative 64 MiB (v7x) fallback if unknown.
    try:
        cap = getattr(pltpu.get_tpu_info(), "vmem_capacity_bytes", None)
        if cap:
            return int(cap)
    except Exception:
        pass
    return 64 * 1024 * 1024


def _choose_tq_and_vmem_limit(C, C8, N_pad, R):
    budget = int(_vmem_capacity_bytes() * 0.85)   # headroom for Mosaic internals
    tq = 128
    for cand in (512, 256, 128):                  # shrink TQ rather than clamp limit
        if N_pad % cand == 0 and _vmem_bytes_est(C, C8, N_pad, cand, R) * 5 // 4 <= budget:
            tq = cand
            break
    tq = min(tq, N_pad)
    limit = min(max(_vmem_bytes_est(C, C8, N_pad, tq, R) * 5 // 4,
                    32 * 1024 * 1024), budget)
    return tq, int(limit)


def tad_block_pallas(x, params):
    """x: (B, C, H, W) float32. Returns (out, tissue), both (B, C, H, W)."""
    B, C, H, W = x.shape
    assert C % 8 == 0, "in_dim must be divisible by 8"
    N = H * W
    C8 = C // 8
    N_pad = _round_up(N, 128)
    R = 2 * C8 + C + 2
    TQ, vmem_limit = _choose_tq_and_vmem_limit(C, C8, N_pad, R)
    n_qt = N_pad // TQ

    xf = x.reshape(B, C, N).astype(jnp.float32)
    if N_pad != N:
        xf = jnp.pad(xf, ((0, 0), (0, 0), (0, N_pad - N)))

    # Fold eval-mode BatchNorm2d(1) into the gate conv.
    # TODO(synk): training-mode BatchNorm (batch statistics) is not reproduced.
    eps = 1e-5
    scale = params["bn_w"] / jnp.sqrt(params["bn_var"] + eps)
    wg_eff = params["wg"] * scale                                         # (1, C)
    bg_eff = (params["bg"] - params["bn_mean"]) * scale + params["bn_b"]  # (1,)

    # Pack the five 1x1-conv weights into a single (R, C) matmul operand.
    w_all = jnp.concatenate(
        [params["wq"], params["wk"], params["wv"], wg_eff, params["wm"]],
        axis=0).astype(jnp.float32)                                       # (R, C)
    b_all = jnp.concatenate(
        [params["bq"], params["bk"], params["bv"], bg_eff, params["bm"]],
        axis=0).reshape(R, 1).astype(jnp.float32)                         # (R, 1)

    kernel = _make_tad_kernel(C, C8, N, N_pad, TQ, _bf16_exp_ok())

    out_f, tissue_f = pl.pallas_call(
        kernel,
        out_shape=(
            jax.ShapeDtypeStruct((B, C, N_pad), jnp.float32),
            jax.ShapeDtypeStruct((B, C, N_pad), jnp.float32),
        ),
        grid=(B, n_qt),
        in_specs=[
            pl.BlockSpec(memory_space=pltpu.MemorySpace.SMEM),            # gamma (1,)
            pl.BlockSpec(memory_space=pl.ANY),                            # x in HBM
            pl.BlockSpec((R, C), lambda b, q: (0, 0)),                    # packed W
            pl.BlockSpec((R, 1), lambda b, q: (0, 0)),                    # packed bias
        ],
        out_specs=(
            pl.BlockSpec((1, C, TQ), lambda b, q: (b, 0, q)),
            pl.BlockSpec((1, C, TQ), lambda b, q: (b, 0, q)),
        ),
        scratch_shapes=[
            pltpu.VMEM((C, N_pad), jnp.float32),         # x slab (single-buffered)
            pltpu.VMEM((C8, N_pad), jnp.bfloat16),       # centered q
            pltpu.VMEM((C8, N_pad), jnp.bfloat16),       # centered k
            pltpu.VMEM((C + 1, N_pad), jnp.bfloat16),    # relu(v) + denominator row
            pltpu.VMEM((1, N_pad), jnp.float32),         # gate
            pltpu.VMEM((C, 1), jnp.float32),             # gamma * anatomy
            pltpu.SemaphoreType.DMA(()),                 # x-slab DMA completion
        ],
        compiler_params=pltpu.CompilerParams(
            dimension_semantics=("parallel", "arbitrary"),
            vmem_limit_bytes=vmem_limit,
        ),
    )(params["gamma"].astype(jnp.float32), xf, w_all, b_all)

    if N_pad != N:
        out_f = out_f[:, :, :N]
        tissue_f = tissue_f[:, :, :N]
    return out_f.reshape(B, C, H, W), tissue_f.reshape(B, C, H, W)


def tad_block_ref(x, params):
    """Pure-JAX reference matching the PyTorch forward (eval-mode BN)."""
    B, C, H, W = x.shape
    N = H * W
    xf = x.reshape(B, C, N)
    conv = lambda w, b: jnp.einsum("oc,bcn->bon", w, xf) + b.reshape(1, -1, 1)

    pq = jnp.transpose(conv(params["wq"], params["bq"]), (0, 2, 1))   # (B,N,C8)
    pq = pq - pq.mean(axis=1, keepdims=True)
    pk = conv(params["wk"], params["bk"])                              # (B,C8,N)
    pk = pk - pk.mean(axis=2, keepdims=True)
    energy = jnp.einsum("bnc,bcm->bnm", pq, pk)
    attention = jax.nn.softmax(energy, axis=-1)

    eps = 1e-5
    scale = params["bn_w"] / jnp.sqrt(params["bn_var"] + eps)
    g = conv(params["wg"], params["bg"])                               # (B,1,N)
    gate = jax.nn.sigmoid((g - params["bn_mean"]) * scale + params["bn_b"])

    att = jnp.transpose(attention, (0, 2, 1)) * gate                   # (B,N,N)
    pv = jax.nn.relu(conv(params["wv"], params["bv"]))                 # (B,C,N)
    tissue = jnp.einsum("bcn,bnm->bcm", pv, att)                       # (B,C,N)

    pm = conv(params["wm"], params["bm"])                              # (B,1,N)
    mask = jax.nn.softmax(pm, axis=-1)
    anatomy = jnp.einsum("bcn,bmn->bcm", pv, mask)                     # (B,C,1)

    out = tissue + anatomy
    out = params["gamma"] * out + xf
    return out.reshape(B, C, H, W), tissue.reshape(B, C, H, W)


def init_params(key, C):
    C8 = C // 8
    ks = jax.random.split(key, 10)
    n = lambda k, shape, s=0.1: jax.random.normal(k, shape, jnp.float32) * s
    return {
        "wq": n(ks[0], (C8, C)), "bq": n(ks[1], (C8,)),
        "wk": n(ks[2], (C8, C)), "bk": n(ks[3], (C8,)),
        "wv": n(ks[4], (C, C)),  "bv": n(ks[5], (C,)),
        "wg": n(ks[6], (1, C)),  "bg": n(ks[7], (1,)),
        "wm": n(ks[8], (1, C)),  "bm": n(ks[9], (1,)),
        # BatchNorm2d(1) defaults (eval mode)
        "bn_w": jnp.ones((1,), jnp.float32),
        "bn_b": jnp.zeros((1,), jnp.float32),
        "bn_mean": jnp.zeros((1,), jnp.float32),
        "bn_var": jnp.ones((1,), jnp.float32),
        # The module initializes gamma to 0 (out == x exactly); use a nonzero
        # value so the attention path is actually exercised.
        "gamma": jnp.full((1,), 0.5, jnp.float32),
    }


if __name__ == "__main__":
    key = jax.random.PRNGKey(0)
    # (padded single-tile), (multi-tile no pad), (multi-tile with padded last tile)
    configs = [(2, 16, 8, 8), (2, 16, 32, 32), (1, 16, 33, 32)]
    for (B, C, H, W) in configs:
        kx, kp, key = jax.random.split(key, 3)
        x = jax.random.normal(kx, (B, C, H, W), jnp.float32)
        params = init_params(kp, C)

        out, tissue = jax.block_until_ready(tad_block_pallas(x, params))
        out_ref, tissue_ref = tad_block_ref(x, params)

        # Looser tolerance: bf16 MXU operands / bf16 exp + approximate reciprocals.
        np.testing.assert_allclose(np.asarray(out), np.asarray(out_ref),
                                   rtol=2e-2, atol=2e-2)
        np.testing.assert_allclose(np.asarray(tissue), np.asarray(tissue_ref),
                                   rtol=2e-2, atol=2e-2)
    print("KERNEL_OK")
</pallas_src>

<mosaic_0001>
module attributes {stable_mosaic.version = 11 : i64} {
  func.func @kernel(%arg0: i32, %arg1: i32, %arg2: memref<1xf32, #tpu.memory_space<smem>>, %arg3: memref<2x16x128xf32, #tpu.memory_space<any>>, %arg4: memref<22x16xf32, #tpu.memory_space<vmem>>, %arg5: memref<22x1xf32, #tpu.memory_space<vmem>>, %arg6: memref<1x16x128xf32, #tpu.memory_space<vmem>>, %arg7: memref<1x16x128xf32, #tpu.memory_space<vmem>>, %arg8: memref<16x128xf32, #tpu.memory_space<vmem>>, %arg9: memref<2x128xbf16, #tpu.memory_space<vmem>>, %arg10: memref<2x128xbf16, #tpu.memory_space<vmem>>, %arg11: memref<17x128xbf16, #tpu.memory_space<vmem>>, %arg12: memref<1x128xf32, #tpu.memory_space<vmem>>, %arg13: memref<16x1xf32, #tpu.memory_space<vmem>>, %arg14: memref<!tpu.dma_semaphore, #tpu.memory_space<semaphore_mem>>) attributes {dimension_semantics = [#tpu.dimension_semantics<parallel>, #tpu.dimension_semantics<arbitrary>], iteration_bounds = array<i64: 2, 1>, scalar_prefetch = 0 : i64, scratch_operands = 7 : i64, tpu.core_type = #tpu.core_type<tc>, window_params = [{transform_indices = @transform_0, window_bounds = array<i64: 1>}, {}, {pipeline_mode = #tpu.pipeline_mode<synchronous>, transform_indices = @transform_2, window_bounds = array<i64: 22, 16>}, {pipeline_mode = #tpu.pipeline_mode<synchronous>, transform_indices = @transform_3, window_bounds = array<i64: 22, 1>}, {transform_indices = @transform_4, window_bounds = array<i64: 1, 16, 128>}, {transform_indices = @transform_5, window_bounds = array<i64: 1, 16, 128>}]} {
    %c0_i32 = arith.constant 0 : i32
    %0 = arith.cmpi eq, %arg1, %c0_i32 : i32
    %1 = arith.extui %0 : i1 to i32
    %c0_i32_0 = arith.constant 0 : i32
    %2 = arith.cmpi ne, %1, %c0_i32_0 : i32
    scf.if %2 {
      %c0_i32_18 = arith.constant 0 : i32
      %c0_i32_19 = arith.constant 0 : i32
      %40 = tpu.memref_slice %arg3[%arg0, %c0_i32_18, %c0_i32_19] : memref<2x16x128xf32, #tpu.memory_space<any>> -> memref<1x16x128xf32, #tpu.memory_space<any>>
      %41 = tpu.memref_squeeze %40 : memref<1x16x128xf32, #tpu.memory_space<any>> -> memref<16x128xf32, #tpu.memory_space<any>>
      tpu.enqueue_dma source(%41 : memref<16x128xf32, #tpu.memory_space<any>>) target(%arg8 : memref<16x128xf32, #tpu.memory_space<vmem>>) target_semaphore(%arg14 : memref<!tpu.dma_semaphore, #tpu.memory_space<semaphore_mem>>)
      %c0_i32_20 = arith.constant 0 : i32
      %c0_i32_21 = arith.constant 0 : i32
      %42 = tpu.memref_slice %arg3[%arg0, %c0_i32_20, %c0_i32_21] : memref<2x16x128xf32, #tpu.memory_space<any>> -> memref<1x16x128xf32, #tpu.memory_space<any>>
      %43 = tpu.memref_squeeze %42 : memref<1x16x128xf32, #tpu.memory_space<any>> -> memref<16x128xf32, #tpu.memory_space<any>>
      tpu.wait_dma2 semaphore(%arg14 : memref<!tpu.dma_semaphore, #tpu.memory_space<semaphore_mem>>) src(%43 : memref<16x128xf32, #tpu.memory_space<any>>) dst(%arg8 : memref<16x128xf32, #tpu.memory_space<vmem>>)
      %c0_22 = arith.constant 0 : index
      %c0_23 = arith.constant 0 : index
      %44 = vector.load %arg8[%c0_22, %c0_23] : memref<16x128xf32, #tpu.memory_space<vmem>>, vector<16x128xf32>
      %c0_24 = arith.constant 0 : index
      %c0_25 = arith.constant 0 : index
      %45 = vector.load %arg4[%c0_24, %c0_25] : memref<22x16xf32, #tpu.memory_space<vmem>>, vector<22x16xf32>
      %46 = arith.truncf %45 : vector<22x16xf32> to vector<22x16xbf16>
      %47 = arith.truncf %44 : vector<16x128xf32> to vector<16x128xbf16>
      %cst_26 = arith.constant dense<0.000000e+00> : vector<22x128xf32>
      %48 = tpu.matmul %46, %47, %cst_26 {dimension_numbers = #tpu.dot_dimension_numbers<[1], [0], [0], [1], [0, 0, 1, 1], [], []>} : vector<22x16xbf16>, vector<16x128xbf16>, vector<22x128xf32> -> vector<22x128xf32>
      %c0_27 = arith.constant 0 : index
      %c0_28 = arith.constant 0 : index
      %49 = vector.load %arg5[%c0_27, %c0_28] : memref<22x1xf32, #tpu.memory_space<vmem>>, vector<22x1xf32>
      %50 = vector.broadcast %49 : vector<22x1xf32> to vector<22x128xf32>
      %51 = arith.addf %48, %50 : vector<22x128xf32>
      %52 = vector.extract_strided_slice %51 {offsets = [0, 0], sizes = [2, 128], strides = [1, 1]} : vector<22x128xf32> to vector<2x128xf32>
      %53 = vector.extract_strided_slice %51 {offsets = [2, 0], sizes = [2, 128], strides = [1, 1]} : vector<22x128xf32> to vector<2x128xf32>
      %54 = vector.extract_strided_slice %51 {offsets = [4, 0], sizes = [16, 128], strides = [1, 1]} : vector<22x128xf32> to vector<16x128xf32>
      %55 = vector.extract_strided_slice %51 {offsets = [20, 0], sizes = [1, 128], strides = [1, 1]} : vector<22x128xf32> to vector<1x128xf32>
      %56 = vector.extract_strided_slice %51 {offsets = [21, 0], sizes = [1, 128], strides = [1, 1]} : vector<22x128xf32> to vector<1x128xf32>
      %57 = tpu.iota {dimensions = array<i32: 1>} : vector<1x128xi32>
      %c64_i32 = arith.constant 64 : i32
      %58 = vector.broadcast %c64_i32 : i32 to vector<1x128xi32>
      %59 = arith.cmpi slt, %57, %58 : vector<1x128xi32>
      %cst_29 = arith.constant 0.000000e+00 : f32
      %60 = vector.shape_cast %59 : vector<1x128xi1> to vector<1x128xi1>
      %61 = vector.broadcast %60 : vector<1x128xi1> to vector<2x128xi1>
      %62 = vector.broadcast %cst_29 : f32 to vector<2x128xf32>
      %63 = arith.select %61, %52, %62 : vector<2x128xi1>, vector<2x128xf32>
      %cst_30 = arith.constant dense<0.000000e+00> : vector<2xf32>
      %64 = vector.multi_reduction <add>, %63, %cst_30 [1] : vector<2x128xf32> to vector<2xf32>
      %65 = vector.shape_cast %64 : vector<2xf32> to vector<2x1xf32>
      %cst_31 = arith.constant 0.000000e+00 : f32
      %66 = vector.shape_cast %59 : vector<1x128xi1> to vector<1x128xi1>
      %67 = vector.broadcast %66 : vector<1x128xi1> to vector<2x128xi1>
      %68 = vector.broadcast %cst_31 : f32 to vector<2x128xf32>
      %69 = arith.select %67, %53, %68 : vector<2x128xi1>, vector<2x128xf32>
      %cst_32 = arith.constant dense<0.000000e+00> : vector<2xf32>
      %70 = vector.multi_reduction <add>, %69, %cst_32 [1] : vector<2x128xf32> to vector<2xf32>
      %71 = vector.shape_cast %70 : vector<2xf32> to vector<2x1xf32>
      %cst_33 = arith.constant 1.562500e-02 : f32
      %72 = vector.broadcast %cst_33 : f32 to vector<2x1xf32>
      %73 = arith.mulf %65, %72 : vector<2x1xf32>
      %74 = vector.broadcast %73 : vector<2x1xf32> to vector<2x128xf32>
      %75 = arith.subf %52, %74 : vector<2x128xf32>
      %cst_34 = arith.constant 1.562500e-02 : f32
      %76 = vector.broadcast %cst_34 : f32 to vector<2x1xf32>
      %77 = arith.mulf %71, %76 : vector<2x1xf32>
      %78 = vector.broadcast %77 : vector<2x1xf32> to vector<2x128xf32>
      %79 = arith.subf %53, %78 : vector<2x128xf32>
      %cst_35 = arith.constant 0.000000e+00 : f32
      %80 = vector.broadcast %cst_35 : f32 to vector<16x128xf32>
      %81 = arith.maximumf %54, %80 : vector<16x128xf32>
      %cst_36 = arith.constant 0.000000e+00 : f32
      %82 = vector.shape_cast %59 : vector<1x128xi1> to vector<1x128xi1>
      %83 = vector.broadcast %82 : vector<1x128xi1> to vector<16x128xi1>
      %84 = vector.broadcast %cst_36 : f32 to vector<16x128xf32>
      %85 = arith.select %83, %81, %84 : vector<16x128xi1>, vector<16x128xf32>
      %86 = arith.negf %55 : vector<1x128xf32>
      %87 = math.exp %86 : vector<1x128xf32>
      %cst_37 = arith.constant 1.000000e+00 : f32
      %88 = vector.broadcast %cst_37 : f32 to vector<1x128xf32>
      %89 = arith.addf %88, %87 : vector<1x128xf32>
      %90 = arith.divf %88, %89 : vector<1x128xf32>
      %cst_38 = arith.constant -1.000000e+30 : f32
      %91 = vector.broadcast %cst_38 : f32 to vector<1x128xf32>
      %92 = arith.select %59, %56, %91 : vector<1x128xi1>, vector<1x128xf32>
      %cst_39 = arith.constant dense<0xFF800000> : vector<1xf32>
      %93 = vector.multi_reduction <maximumf>, %92, %cst_39 [1] : vector<1x128xf32> to vector<1xf32>
      %94 = vector.shape_cast %93 : vector<1xf32> to vector<1x1xf32>
      %95 = vector.broadcast %94 : vector<1x1xf32> to vector<1x128xf32>
      %96 = arith.subf %92, %95 : vector<1x128xf32>
      %97 = math.exp %96 : vector<1x128xf32>
      %98 = vector.broadcast %97 : vector<1x128xf32> to vector<16x128xf32>
      %99 = arith.mulf %85, %98 : vector<16x128xf32>
      %cst_40 = arith.constant dense<0.000000e+00> : vector<16xf32>
      %100 = vector.multi_reduction <add>, %99, %cst_40 [1] : vector<16x128xf32> to vector<16xf32>
      %101 = vector.shape_cast %100 : vector<16xf32> to vector<16x1xf32>
      %cst_41 = arith.constant dense<0.000000e+00> : vector<1xf32>
      %102 = vector.multi_reduction <add>, %97, %cst_41 [1] : vector<1x128xf32> to vector<1xf32>
      %103 = vector.shape_cast %102 : vector<1xf32> to vector<1x1xf32>
      %104 = tpu.reciprocal %103 {approx = true} : vector<1x1xf32> -> vector<1x1xf32>
      %105 = vector.broadcast %104 : vector<1x1xf32> to vector<16x1xf32>
      %106 = arith.mulf %101, %105 : vector<16x1xf32>
      %107 = arith.truncf %75 : vector<2x128xf32> to vector<2x128xbf16>
      %c0_42 = arith.constant 0 : index
      %c0_43 = arith.constant 0 : index
      %108 = vector.load %arg9[%c0_42, %c0_43] : memref<2x128xbf16, #tpu.memory_space<vmem>>, vector<2x128xbf16>
      tpu.vector_store %arg9[%c0_42, %c0_43], %107 {strides = array<i32>} : memref<2x128xbf16, #tpu.memory_space<vmem>>, vector<2x128xbf16>,
      %109 = arith.truncf %79 : vector<2x128xf32> to vector<2x128xbf16>
      %c0_44 = arith.constant 0 : index
      %c0_45 = arith.constant 0 : index
      %110 = vector.load %arg10[%c0_44, %c0_45] : memref<2x128xbf16, #tpu.memory_space<vmem>>, vector<2x128xbf16>
      tpu.vector_store %arg10[%c0_44, %c0_45], %109 {strides = array<i32>} : memref<2x128xbf16, #tpu.memory_space<vmem>>, vector<2x128xbf16>,
      %111 = arith.truncf %85 : vector<16x128xf32> to vector<16x128xbf16>
      %c0_46 = arith.constant 0 : index
      %c0_47 = arith.constant 0 : index
      %112 = vector.load %arg11[%c0_46, %c0_47] : memref<17x128xbf16, #tpu.memory_space<vmem>>, vector<16x128xbf16>
      tpu.vector_store %arg11[%c0_46, %c0_47], %111 {strides = array<i32>} : memref<17x128xbf16, #tpu.memory_space<vmem>>, vector<16x128xbf16>,
      %cst_48 = arith.constant 1.000000e+00 : f32
      %cst_49 = arith.constant 0.000000e+00 : f32
      %113 = vector.broadcast %cst_48 : f32 to vector<1x128xf32>
      %114 = vector.broadcast %cst_49 : f32 to vector<1x128xf32>
      %115 = arith.select %59, %113, %114 : vector<1x128xi1>, vector<1x128xf32>
      %116 = arith.truncf %115 : vector<1x128xf32> to vector<1x128xbf16>
      %c16 = arith.constant 16 : index
      %c0_50 = arith.constant 0 : index
      %117 = vector.load %arg11[%c16, %c0_50] : memref<17x128xbf16, #tpu.memory_space<vmem>>, vector<1x128xbf16>
      tpu.vector_store %arg11[%c16, %c0_50], %116 {strides = array<i32>} : memref<17x128xbf16, #tpu.memory_space<vmem>>, vector<1x128xbf16>,
      %c0_51 = arith.constant 0 : index
      %c0_52 = arith.constant 0 : index
      %118 = vector.load %arg12[%c0_51, %c0_52] : memref<1x128xf32, #tpu.memory_space<vmem>>, vector<1x128xf32>
      tpu.vector_store %arg12[%c0_51, %c0_52], %90 {strides = array<i32>} : memref<1x128xf32, #tpu.memory_space<vmem>>, vector<1x128xf32>,
      %c0_53 = arith.constant 0 : index
      %119 = memref.load %arg2[%c0_53] : memref<1xf32, #tpu.memory_space<smem>>
      %120 = vector.broadcast %119 : f32 to vector<16x1xf32>
      %121 = arith.mulf %120, %106 : vector<16x1xf32>
      %c0_54 = arith.constant 0 : index
      %c0_55 = arith.constant 0 : index
      %122 = vector.load %arg13[%c0_54, %c0_55] : memref<16x1xf32, #tpu.memory_space<vmem>>, vector<16x1xf32>
      tpu.vector_store %arg13[%c0_54, %c0_55], %121 {strides = array<i32>} : memref<16x1xf32, #tpu.memory_space<vmem>>, vector<16x1xf32>,
    } else {
    }
    %c128_i32 = arith.constant 128 : i32
    %3 = arith.muli %arg1, %c128_i32 : i32
    %4 = tpu.assume_multiple %3, 128 : i32
    %c0 = arith.constant 0 : index
    %5 = arith.index_cast %4 : i32 to index
    %6 = vector.load %arg9[%c0, %5] : memref<2x128xbf16, #tpu.memory_space<vmem>>, vector<2x128xbf16>
    %c0_1 = arith.constant 0 : index
    %c0_2 = arith.constant 0 : index
    %7 = vector.load %arg10[%c0_1, %c0_2] : memref<2x128xbf16, #tpu.memory_space<vmem>>, vector<2x128xbf16>
    %cst = arith.constant dense<0.000000e+00> : vector<128x128xf32>
    %8 = tpu.matmul %6, %7, %cst {dimension_numbers = #tpu.dot_dimension_numbers<[0], [0], [1], [1], [0, 1, 1, 1], [], []>} : vector<2x128xbf16>, vector<2x128xbf16>, vector<128x128xf32> -> vector<128x128xf32>
    %cst_3 = arith.constant dense<0xFF800000> : vector<128xf32>
    %9 = vector.multi_reduction <maximumf>, %8, %cst_3 [1] : vector<128x128xf32> to vector<128xf32>
    %10 = vector.shape_cast %9 : vector<128xf32> to vector<128x1xf32>
    %11 = vector.broadcast %10 : vector<128x1xf32> to vector<128x128xf32>
    %12 = arith.subf %8, %11 : vector<128x128xf32>
    %13 = arith.truncf %12 : vector<128x128xf32> to vector<128x128xbf16>
    %14 = math.exp %13 : vector<128x128xbf16>
    %c0_4 = arith.constant 0 : index
    %c0_5 = arith.constant 0 : index
    %15 = vector.load %arg11[%c0_4, %c0_5] : memref<17x128xbf16, #tpu.memory_space<vmem>>, vector<17x128xbf16>
    %cst_6 = arith.constant dense<0.000000e+00> : vector<17x128xf32>
    %16 = tpu.matmul %15, %14, %cst_6 {dimension_numbers = #tpu.dot_dimension_numbers<[1], [1], [0], [0], [0, 0, 1, 0], [], []>} : vector<17x128xbf16>, vector<128x128xbf16>, vector<17x128xf32> -> vector<17x128xf32>
    %17 = vector.extract_strided_slice %16 {offsets = [0, 0], sizes = [16, 128], strides = [1, 1]} : vector<17x128xf32> to vector<16x128xf32>
    %18 = vector.extract_strided_slice %16 {offsets = [16, 0], sizes = [1, 128], strides = [1, 1]} : vector<17x128xf32> to vector<1x128xf32>
    %c0_7 = arith.constant 0 : index
    %19 = arith.index_cast %4 : i32 to index
    %20 = vector.load %arg12[%c0_7, %19] : memref<1x128xf32, #tpu.memory_space<vmem>>, vector<1x128xf32>
    %21 = tpu.reciprocal %18 {approx = true} : vector<1x128xf32> -> vector<1x128xf32>
    %22 = arith.mulf %20, %21 : vector<1x128xf32>
    %23 = vector.broadcast %22 : vector<1x128xf32> to vector<16x128xf32>
    %24 = arith.mulf %17, %23 : vector<16x128xf32>
    %c0_8 = arith.constant 0 : index
    %25 = arith.index_cast %4 : i32 to index
    %26 = vector.load %arg8[%c0_8, %25] : memref<16x128xf32, #tpu.memory_space<vmem>>, vector<16x128xf32>
    %c0_9 = arith.constant 0 : index
    %27 = memref.load %arg2[%c0_9] : memref<1xf32, #tpu.memory_space<smem>>
    %28 = vector.broadcast %27 : f32 to vector<16x128xf32>
    %29 = arith.mulf %28, %24 : vector<16x128xf32>
    %c0_10 = arith.constant 0 : index
    %c0_11 = arith.constant 0 : index
    %30 = vector.load %arg13[%c0_10, %c0_11] : memref<16x1xf32, #tpu.memory_space<vmem>>, vector<16x1xf32>
    %31 = vector.broadcast %30 : vector<16x1xf32> to vector<16x128xf32>
    %32 = arith.addf %29, %31 : vector<16x128xf32>
    %33 = arith.addf %32, %26 : vector<16x128xf32>
    %c0_12 = arith.constant 0 : index
    %c0_13 = arith.constant 0 : index
    %c0_14 = arith.constant 0 : index
    %34 = vector.load %arg6[%c0_12, %c0_13, %c0_14] : memref<1x16x128xf32, #tpu.memory_space<vmem>>, vector<1x16x128xf32>
    %35 = vector.shape_cast %34 : vector<1x16x128xf32> to vector<16x128xf32>
    %36 = vector.shape_cast %33 : vector<16x128xf32> to vector<1x16x128xf32>
    tpu.vector_store %arg6[%c0_12, %c0_13, %c0_14], %36 {strides = array<i32>} : memref<1x16x128xf32, #tpu.memory_space<vmem>>, vector<1x16x128xf32>,
    %c0_15 = arith.constant 0 : index
    %c0_16 = arith.constant 0 : index
    %c0_17 = arith.constant 0 : index
    %37 = vector.load %arg7[%c0_15, %c0_16, %c0_17] : memref<1x16x128xf32, #tpu.memory_space<vmem>>, vector<1x16x128xf32>
    %38 = vector.shape_cast %37 : vector<1x16x128xf32> to vector<16x128xf32>
    %39 = vector.shape_cast %24 : vector<16x128xf32> to vector<1x16x128xf32>
    tpu.vector_store %arg7[%c0_15, %c0_16, %c0_17], %39 {strides = array<i32>} : memref<1x16x128xf32, #tpu.memory_space<vmem>>, vector<1x16x128xf32>,
    return
  }
  func.func @transform_0(%arg0: i32, %arg1: i32) -> i32 {
    %c0_i32 = arith.constant 0 : i32
    %c0_i32_0 = arith.constant 0 : i32
    return %c0_i32 : i32
  }
  func.func @transform_2(%arg0: i32, %arg1: i32) -> (i32, i32) {
    %c0_i32 = arith.constant 0 : i32
    %c0_i32_0 = arith.constant 0 : i32
    %c0_i32_1 = arith.constant 0 : i32
    return %c0_i32, %c0_i32_0 : i32, i32
  }
  func.func @transform_3(%arg0: i32, %arg1: i32) -> (i32, i32) {
    %c0_i32 = arith.constant 0 : i32
    %c0_i32_0 = arith.constant 0 : i32
    %c0_i32_1 = arith.constant 0 : i32
    return %c0_i32, %c0_i32_0 : i32, i32
  }
  func.func @transform_4(%arg0: i32, %arg1: i32) -> (i32, i32, i32) {
    %c0_i32 = arith.constant 0 : i32
    %c0_i32_0 = arith.constant 0 : i32
    return %arg0, %c0_i32, %arg1 : i32, i32, i32
  }
  func.func @transform_5(%arg0: i32, %arg1: i32) -> (i32, i32, i32) {
    %c0_i32 = arith.constant 0 : i32
    %c0_i32_0 = arith.constant 0 : i32
    return %arg0, %c0_i32, %arg1 : i32, i32, i32
  }
}

</mosaic_0001>

<bundles_post_ra>
// kernel: tpu_custom_call.1
= control target key start
LH: loop header
LB: loop body
LE: loop exit
PB: predicated region body
PF: predicated region fallthrough
CT: control target
= control target key end

     0   :  { %s1425_s0 = inlined_call_operand.<no memory space> [shape: f32[1], index: 0, kind: input, shape index: {}]   ;;  %s1426_s1 = inlined_call_operand.vmem [shape: f32[2,16,128], index: 1, kind: input, shape index: {}]   ;;  %s1427_s2 = inlined_call_operand.vmem [shape: f32[22,16], index: 2, kind: input, shape index: {}]   ;;  %s1428_s3 = inlined_call_operand.vmem [shape: f32[22,1], index: 3, kind: input, shape index: {}]   ;;  %s1429_s4 = inlined_call_operand.hbm [shape: f32[2,16,128], index: 4, kind: output, shape index: {0}]   ;;  %s1430_s5 = inlined_call_operand.hbm [shape: f32[2,16,128], index: 5, kind: output, shape index: {1}]  }
   0x1   :  { %11 = sst [smem:[#allocation9]] %s1425_s0 }
   0x2   :  { %12 = vsyncpa [#allocation11], 0 }
   0x3   :  { %14 = vsyncpa [#allocation11 + $0x1], 0 }
   0x4   :  { %15 = vsyncpa [#allocation13], 0 }
   0x5   :  { %17 = vsyncpa [#allocation13 + $0x1], 0  ;;  %s1140_s20 = smov 0   ;;  %s1142_s21 = smov 0  }
   0x6   :  { %s1144_s22 = smov 0   ;;  %s1146_s23 = smov 0  }
   0x7   :  { %s1148_s24 = smov 0   ;;  %s1150_s25 = smov 0  }
   0x8 LB: > { %s837_s0 = sadd.s32 4294967295, %s1101_s25   ;;  %s838_s26 = sadd.s32 4294967294, %s1101_s25   ;;  %s1101_s25 = sphi %s1150_s25, %s23_s25   ;;  %s1097_s24 = sphi %s1148_s24, %s1439_s24   ;;  %s1093_s23 = sphi %s1146_s23, %s1438_s23   ;;  %s1089_s22 = sphi %s1144_s22, %s1437_s22   ;;  %s1085_s21 = sphi %s1142_s21, %s1436_s21   ;;  %s1081_s20 = sphi %s1140_s20, %s1435_s20  }
   0x9   : > { %s35_s27 = sadd.s32 1, %s1097_s24  ;;  %s107_s28 = sadd.s32 1, %s1089_s22 }
   0xa   : > { %p37_p0 = scmp.ge.s32.totalorder %s35_s27, 2  ;;  %p117_p1 = scmp.ne.s32.totalorder %s1089_s22, %s1085_s21 }
   0xb   : > { %p118_p2 = scmp.eq.s32.totalorder %s837_s0, 1  ;;  %p123_p3 = scmp.ne.s32.totalorder %s1085_s21, %s1081_s20 }
   0xc   : > { %s1441_s27 = smov (%p37_p0, %s35_s27), 0  ;;  %p124_p5 = scmp.eq.s32.totalorder %s838_s26, 1 }
   0xd   : > { %p1178_p4 = por %p118_p2, %p117_p1  ;;  %s102_s30 = ssub.s32 %s1097_s24, %s1441_s27 }
   0xe   : > { %p840_p6 = scmp.ge.s32.totalorder %s1101_s25, 1  ;;  %p105_p7 = scmp.eq.s32.totalorder %s102_s30, 0 }
   0xf   : > { %p1185_p8 = por %p124_p5, %p123_p3  ;;  %p179_p9 = scmp.lt.s32.totalorder %s1101_s25, 3 }
  0x10   : > { %s1191_s7 = scalar_select %p105_p7, %s1089_s22, %s107_s28  }
  0x11   : > { %p180_p10 = pnand %p840_p6, %p179_p9 }
  0x12   : > { %s1194_s8 = sand.u32 (!%p180_p10), 1, %s1085_s21   ;;  %s1196_s9 = sshll.u32 (!%p180_p10), %s1093_s23, 4 }
  0x13   : > { %183 = sbr.rel (%p180_p10) target bundleno = 1268 (0x4f4), region = 32  ;;  %s841_s10 = sshll.u32 (!%p180_p10), %s1194_s8, 4 }
  0x14   : > { %s211_s13 = scalar_lea.vmem (!%p180_p10), %s1426_s1, %s1196_s9  ;;  %s1207_s14 = scalar_lea.vmem (!%p180_p10), [#allocation10], %s841_s10 }
  0x15   : > { %s1209_s15 = scalar_lea.vmem (!%p180_p10), [#allocation12], %s841_s10 }
  0x18   : > { %v1203_v0 = vld [vmem:[%s211_s13] sm:$0xff]  ;;  %v1205_v1 = vld [vmem:[%s211_s13 + $0x8] sm:$0xff] }
  0x19   : > { %231 = vsyncadd [#allocation8], 256 }
  0x1a   : > { %1069 = dma.done.wait [#allocation8], 256 }
  0x1b   : > { %1070 = vsyncadd [#allocation8], 4294967040  ;;  %v242_v2 = vpack.c.bf16 %v1205_v1, %v1203_v0  ;;  %v1103_v3 = vmov 0   ;;  %v237_v4 = vld [vmem:[%s1427_s2] sm:$0xff]  ;;  %v238_v5 = vld [vmem:[%s1427_s2 + $0x8] sm:$0xff]  ;;  %vm261_vm0 = vcmask 130048   ;;  %v286_v8 = vlaneseq  ;;  %s723_s18 = scalar_lea.hbm %s1430_s5, %s1196_s9 }
  0x1c   : > { %945 = vset.pattern.permute.xlu0 %v1103_v3  ;;  %946 = vset.pattern.permute.xlu2 %v1103_v3  ;;  %v243_v6 = vld [vmem:[%s1428_s3] sm:$0xff]  ;;  %v240_v7 = vpack.c.bf16 %v238_v5, %v237_v4  ;;  %vm296_vm2 = vcmask 1043458   ;;  %vm292_vm3 = vcmask 1041408   ;;  %vm390_vm4 = vcmask 1040384   ;;  %v393_v18 = vld [vmem:[#allocation5 + $0x8] sm:$0x1] }
  0x1d   : > { %275 = vmatpush.bf16.msra.mxu0 %v242_v2  ;;  %248 = vperm.xlu0 %945, %v243_v6   ;;  %v1223_v9 = vand.u32 127, %v286_v8  ;;  %vm391_vm5 = vsmask.f32 256  ;;  %v1104_v16 = vmov 0.0   ;;  %vm430_vm7 = vcmask 15360   ;;  %v244_v58 = vld [vmem:[%s1428_s3 + $0x8] sm:$0xff] }
  0x1e   : > { %vm392_vm6 = vmand %vm390_vm4, %vm391_vm5  ;;  %v239_v55 = vld [vmem:[%s1427_s2 + $0x10] sm:$0x3f]  ;;  %vm375_vm8 = vcmask 1045508   ;;  %vm330_vm10 = vcmask 1045509   ;;  %vm341_vm15 = vcmask 1047556   ;;  %s397_s13 = sld [smem:[#allocation9]] }
  0x1f   : > { %vm288_vm1 = vcmp.lt.s32.totalorder %v1223_v9, 64  ;;  %v241_v56 = vpack.c.bf16 %v239_v55, %v239_v55  ;;  %v245_v60 = vld [vmem:[%s1428_s3 + $0x10] sm:$0x3f]  ;;  %vm1314_vm9 = vmor %vm292_vm3, %vm375_vm8  ;;  %s724_s19 = sshll.u32 %s1209_s15, 4  ;;  %s726_s23 = sshll.u32 %s723_s18, 4  ;;  %s725_s19 = int_to_ptr.vmem [resolvable:$true] %s724_s19  ;;  %s727_s23 = int_to_ptr.hbm [resolvable:$true] %s726_s23 }
  0x20   : > { %844 = vmatmul.msk.bf16.vlgmr.msra.gmra.mxu0 %vm261_vm0, %v240_v7  ;;  %v388_v17 = vsel %vm288_vm1, 1.0, %v1104_v16  ;;  %s693_s0 = scalar_lea.sflag [#allocation13], %s1194_s8  ;;  %s1003_s26 = sshra.s32 %s727_s23, 4  ;;  %s1004_s26 = int_to_ptr.hbm [resolvable:$true] %s1003_s26 }
  0x21   : > { %v389_v19 = vpack.c.bf16 %v388_v17, %v388_v17  ;;  %s1005_s28 = scalar_lea.hbm %s1004_s26, 16  ;;  %s1009_s11 = scalar_lea.hbm %s1430_s5, 32 }
  0x22   : > { %p1006_p11 = scmp.ne.s32.totalorder %s1004_s26, %s1005_s28  ;;  %p1010_p0 = scmp.lt.s32.totalorder %s1004_s26, %s1430_s5 }
  0x23   : > { %v394_v20 = vsel %vm392_vm6, %v389_v19, %v393_v18  ;;  %p1011_p1 = scmp.lt.s32.totalorder %s1009_s11, %s1005_s28 }
  0x24   : > { %395 = vst [vmem:[#allocation5 + $0x8] sm:$0x1] %v394_v20  ;;  %p1007_p12 = pnand %p1006_p11, %p1178_p4 }
  0x25   : > { %p1012_p2 = por %p1011_p1, %p1010_p0 }
  0x26   : > { %p1008_p13 = pneg %p1007_p12 }
  0x28   : > { %p1013_p3 = pnand %p1012_p2, %p1008_p13 }
  0x30   : > { %845 = vmatmul.msk.bf16.gmra.mxu0 %vm261_vm0, %v241_v56  ;;  %vm347_vm0 = vcmask 1043456  }
  0x8f   : > { %v249_v10 = vpop.permute.xlu0 %248 }
  0x9d   : > { %v277_v11 = vpop.f32.mrf.mxu0 }
  0x9e   : > { %v1226_v12 = vadd.f32 %v277_v11, %v249_v10 }
  0xa0   : > { %v291_v13 = vsel %vm288_vm1, %v1226_v12, 0.0  ;;  %v304_v8 = vmax.f32 %v1226_v12, 0.0 }
  0xa1   : > { %v297_v14 = vsel %vm296_vm2, %v291_v13, 0.0  ;;  %v293_v15 = vsel %vm292_vm3, %v291_v13, 0.0  ;;  %vm406_vm2 = vcmask 3072   ;;  %vm404_vm3 = vcmask 7168  }
  0xa2   : > { %298 = vadd.xlane.f32.xlu1 %v297_v14  ;;  %294 = vadd.xlane.f32.xlu0 %v293_v15  ;;  %v1301_v14 = vsel %vm288_vm1, %v304_v8, 0.0 }
  0xa3   : > { %v368_v18 = vpack.c.bf16 %v1301_v14, %v1301_v14 }
  0xa5   : > { %v279_v11 = vpop.f32.mrf.mxu0 }
 0x115   : > { %v299_v21 = vpop.xlane.xlu1 %298  ;;  %v295_v22 = vpop.xlane.xlu0 %294 }
 0x116   : > { %v302_v23 = vmul.f32 0.015625, %v299_v21  ;;  %v300_v24 = vmul.f32 0.015625, %v295_v22 }
 0x118   : > { %v303_v25 = vsub.f32 %v1226_v12, %v302_v23  ;;  %v301_v26 = vsub.f32 %v1226_v12, %v300_v24  ;;  %v1311_v24 = vpop.f32.mrf.mxu0 }
 0x11a   : > { %v361_v27 = vpack.c.bf16 %v303_v25, %v303_v25  ;;  %v359_v28 = vpack.c.bf16 %v301_v26, %v301_v26 }
 0x11c   : > { %363 = vst [vmem:[#allocation1] sm:$0xff] %v361_v27  ;;  %v847_v27 = vrot.slane %v368_v18, 10 }
 0x11d   : > { %360 = vst [vmem:[#allocation3] sm:$0x1] %v359_v28 }
 0x123   : > { %v365_v29 = vld [vmem:[#allocation1 + $0x1] ss:$4 sm:$0xff] }
 0x124   : > { %v412_v30 = vld [vmem:[#allocation3] sm:$0x1]  ;;  %367 = vst [vmem:[#allocation4] sm:$0x1] %v365_v29 }
 0x125   : > { %414 = vxpose.xlu1.c.b16.start.end [1/1] (short) %v412_v30, 128 }
 0x12b   : > { %v413_v31 = vld [vmem:[#allocation4] sm:$0x1] }
 0x12c   : > { %v457_v32 = vsel %vm390_vm4, %v413_v31, 0 }
 0x12d   : > { %466 = vmatpush.bf16.msra.mxu1 %v457_v32  ;;  %872 = vmatpush.bf16.msra.mxu3 %v457_v32 }
 0x1d1   : > { %v422_v33 = vpop.trf.xlu1 }
 0x1d2   : > { %848 = vmatmul.msk.bf16.vlgmr.msra.gmra.mxu1 %vm430_vm7, %v422_v33 }
 0x1e1   : > { %v423_v34 = vpop.trf.xlu1 }
 0x1e2   : > { %849 = vmatmul.msk.bf16.gmra.mxu1 %vm430_vm7, %v423_v34 }
 0x1f1   : > { %v424_v35 = vpop.trf.xlu1 }
 0x1f2   : > { %850 = vmatmul.msk.bf16.gmra.mxu1 %vm430_vm7, %v424_v35 }
 0x201   : > { %v425_v36 = vpop.trf.xlu1 }
 0x202   : > { %851 = vmatmul.msk.bf16.gmra.mxu1 %vm430_vm7, %v425_v36 }
 0x211   : > { %v426_v37 = vpop.trf.xlu1 }
 0x212   : > { %852 = vmatmul.msk.bf16.vlgmr.msra.gmra.mxu3 %vm430_vm7, %v426_v37 }
 0x221   : > { %v427_v38 = vpop.trf.xlu1 }
 0x222   : > { %853 = vmatmul.msk.bf16.gmra.mxu3 %vm430_vm7, %v427_v38 }
 0x231   : > { %v428_v39 = vpop.trf.xlu1 }
 0x232   : > { %854 = vmatmul.msk.bf16.gmra.mxu3 %vm430_vm7, %v428_v39 }
 0x241   : > { %v429_v40 = vpop.trf.xlu1 }
 0x242   : > { %855 = vmatmul.msk.bf16.gmra.mxu3 %vm430_vm7, %v429_v40  ;;  %v284_v40 = vpop.f32.mrf.mxu0 }
 0x24f   : > { %v1246_v41 = vpop.f32.mrf.mxu1 }
 0x257   : > { %v1248_v42 = vpop.f32.mrf.mxu1 }
 0x25f   : > { %v1250_v43 = vpop.f32.mrf.mxu1 }
 0x260   : > { %512 = vmax.xlane.f32.xlu1 %v1250_v43 }
 0x267   : > { %v1253_v44 = vpop.f32.mrf.mxu1 }
 0x26f   : > { %v1255_v45 = vpop.f32.mrf.mxu1 }
 0x277   : > { %v1257_v46 = vpop.f32.mrf.mxu1 }
 0x27f   : > { %v1262_v48 = vpop.f32.mrf.mxu1 }
 0x287   : > { %v1267_v50 = vpop.f32.mrf.mxu1 }
 0x295   : > { %v1259_v47 = vpop.f32.mrf.mxu3 }
 0x296   : > { %524 = vmax.xlane.f32.xlu2 %v1259_v47 }
 0x29d   : > { %v1264_v49 = vpop.f32.mrf.mxu3 }
 0x29e   : > { %526 = vmax.xlane.f32.xlu0 %v1264_v49 }
 0x2a5   : > { %v1269_v51 = vpop.f32.mrf.mxu3 }
 0x2a6   : > { %522 = vmax.xlane.f32.xlu0 %v1267_v50  ;;  %528 = vmax.xlane.f32.xlu2 %v1269_v51 }
 0x2ad   : > { %v1273_v52 = vpop.f32.mrf.mxu3 }
 0x2ae   : > { %518 = vmax.xlane.f32.xlu0 %v1257_v46  ;;  %530 = vmax.xlane.f32.xlu2 %v1273_v52 }
 0x2b5   : > { %v498_v53 = vpop.f32.mrf.mxu3 }
 0x2b6   : > { %508 = vmax.xlane.f32.xlu0 %v1246_v41  ;;  %532 = vmax.xlane.f32.xlu2 %v498_v53 }
 0x2bd   : > { %v500_v54 = vpop.f32.mrf.mxu3 }
 0x2be   : > { %534 = vmax.xlane.f32.xlu2 %v500_v54 }
 0x2c5   : > { %v503_v57 = vpop.f32.mrf.mxu3 }
 0x2c6   : > { %536 = vmax.xlane.f32.xlu2 %v503_v57 }
 0x2ca   : > { %253 = vperm.xlu0 %945, %v244_v58  }
 0x2cd   : > { %v505_v59 = vpop.f32.mrf.mxu3 }
 0x2ce   : > { %538 = vmax.xlane.f32.xlu2 %v505_v59 }
 0x2d6   : > { %520 = vmax.xlane.f32.xlu2 %v1262_v48 }
 0x2de   : > { %516 = vmax.xlane.f32.xlu2 %v1255_v45 }
 0x2e6   : > { %514 = vmax.xlane.f32.xlu2 %v1253_v44 }
 0x2ee   : > { %510 = vmax.xlane.f32.xlu2 %v1248_v42 }
 0x306   : > { %258 = vperm.xlu2 %946, %v245_v60  }
 0x309   : > { %v525_v61 = vpop.xlane.xlu2 %524 }
 0x311   : > { %v527_v62 = vpop.xlane.xlu0 %526 }
 0x319   : > { %v529_v63 = vpop.xlane.xlu2 %528  ;;  %v1292_v2 = vpop.xlane.xlu0 %522 }
 0x31a   : > { %v550_v39 = vsub.f32 %v1269_v51, %v529_v63 }
 0x321   : > { %v531_v3 = vpop.xlane.xlu2 %530  ;;  %v1294_v5 = vpop.xlane.xlu0 %518 }
 0x322   : > { %v551_v33 = vsub.f32 %v1273_v52, %v531_v3  ;;  %v548_v3 = vsub.f32 %v1259_v47, %v525_v61 }
 0x329   : > { %v533_v4 = vpop.xlane.xlu2 %532  ;;  %v1296_v7 = vpop.xlane.xlu0 %508 }
 0x32a   : > { %v552_v12 = vsub.f32 %v498_v53, %v533_v4  ;;  %v561_v53 = vpack.c.bf16 %v551_v33, %v550_v39  ;;  %v540_v9 = vsub.f32 %v1246_v41, %v1296_v7 }
 0x32c   : > { %v574_v58 = vunpack.c.l.bf16 %v561_v53  ;;  %v575_v52 = vunpack.c.h.bf16 %v561_v53 }
 0x32e   : > { %v600_v51 = vmul.f32 1.442695, %v574_v58  ;;  %v602_v63 = vmul.f32 1.442695, %v575_v52 }
 0x331   : > { %v535_v6 = vpop.xlane.xlu2 %534 }
 0x332   : > { %v553_v17 = vsub.f32 %v500_v54, %v535_v6 }
 0x334   : > { %v562_v26 = vpack.c.bf16 %v553_v17, %v552_v12 }
 0x336   : > { %v576_v34 = vunpack.c.l.bf16 %v562_v26  ;;  %v577_v37 = vunpack.c.h.bf16 %v562_v26 }
 0x338   : > { %v604_v54 = vmul.f32 1.442695, %v576_v34  ;;  %v606_v55 = vmul.f32 1.442695, %v577_v37 }
 0x339   : > { %v537_v10 = vpop.xlane.xlu2 %536 }
 0x33a   : > { %v554_v21 = vsub.f32 %v503_v57, %v537_v10  ;;  %v549_v57 = vsub.f32 %v1264_v49, %v527_v62 }
 0x33c   : > { %v254_v13 = vpop.permute.xlu0 %253  ;;  %v560_v6 = vpack.c.bf16 %v549_v57, %v548_v3 }
 0x33d   : > { %v280_v15 = vadd.f32 %v279_v11, %v254_v13 }
 0x33e   : > { %v572_v11 = vunpack.c.l.bf16 %v560_v6  ;;  %v573_v62 = vunpack.c.h.bf16 %v560_v6 }
 0x33f   : > { %v305_v16 = vmax.f32 %v280_v15, 0.0  ;;  %v547_v15 = vsub.f32 %v1267_v50, %v1292_v2 }
 0x340   : > { %v596_v47 = vmul.f32 1.442695, %v572_v11  ;;  %v598_v17 = vmul.f32 1.442695, %v573_v62 }
 0x341   : > { %v1307_v19 = vsel %vm288_vm1, %v305_v16, 0.0  ;;  %v539_v20 = vpop.xlane.xlu2 %538 }
 0x342   : > { %v369_v22 = vpack.c.bf16 %v1307_v19, %v1307_v19  ;;  %v555_v23 = vsub.f32 %v505_v59, %v539_v20 }
 0x344   : > { %v1318_v28 = vrot.slane %v369_v22, 6  ;;  %v563_v29 = vpack.c.bf16 %v555_v23, %v554_v21 }
 0x346   : > { %v380_v30 = vsel %vm1314_vm9, %v847_v27, %v1318_v28  ;;  %v578_v31 = vunpack.c.l.bf16 %v563_v29  ;;  %v579_v32 = vunpack.c.h.bf16 %v563_v29  ;;  %v381_v58 = vrot.slane %v1318_v28, 4 }
 0x347   : > { %386 = vst [vmem:[#allocation5] sm:$0xf] %v380_v30 }
 0x348   : > { %v608_v35 = vmul.f32 1.442695, %v578_v31  ;;  %v610_v36 = vmul.f32 1.442695, %v579_v32  ;;  %v513_v31 = vpop.xlane.xlu1 %512 }
 0x349   : > { %v521_v38 = vpop.xlane.xlu2 %520 }
 0x34a   : > { %947 = vpow2.f32 %v608_v35  ;;  %v546_v49 = vsub.f32 %v1262_v48, %v521_v38  ;;  %v545_v48 = vsub.f32 %v1257_v46, %v1294_v5  ;;  %v542_v46 = vsub.f32 %v1250_v43, %v513_v31 }
 0x34b   : > { %949 = vpow2.f32 %v610_v36 }
 0x34c   : > { %951 = vpow2.f32 %v604_v54  ;;  %v559_v61 = vpack.c.bf16 %v547_v15, %v546_v49 }
 0x34d   : > { %953 = vpow2.f32 %v606_v55 }
 0x34e   : > { %955 = vpow2.f32 %v600_v51  ;;  %v570_v21 = vunpack.c.l.bf16 %v559_v61  ;;  %v571_v22 = vunpack.c.h.bf16 %v559_v61 }
 0x34f   : > { %957 = vpow2.f32 %v602_v63 }
 0x350   : > { %v948_v56 = vpop.eup %947  ;;  %959 = vpow2.f32 %v596_v47  ;;  %v592_v2 = vmul.f32 1.442695, %v570_v21  ;;  %v594_v27 = vmul.f32 1.442695, %v571_v22 }
 0x351   : > { %v950_v59 = vpop.eup %949  ;;  %v517_v60 = vpop.xlane.xlu2 %516  ;;  %961 = vpow2.f32 %v598_v17 }
 0x352   : > { %v619_v4 = vpack.c.bf16 %v950_v59, %v948_v56  ;;  %v952_v8 = vpop.eup %951  ;;  %v544_v12 = vsub.f32 %v1255_v45, %v517_v60  ;;  %963 = vpow2.f32 %v592_v2 }
 0x353   : > { %v954_v10 = vpop.eup %953  ;;  %965 = vpow2.f32 %v594_v27 }
 0x354   : > { %633 = vmatpush.bf16.xpose.msrb.mxu0 %v619_v4  ;;  %873 = vmatpush.bf16.xpose.msra.mxu2 %v619_v4  ;;  %v618_v16 = vpack.c.bf16 %v954_v10, %v952_v8  ;;  %v956_v18 = vpop.eup %955  ;;  %v558_v50 = vpack.c.bf16 %v545_v48, %v544_v12 }
 0x355   : > { %v958_v20 = vpop.eup %957 }
 0x356   : > { %v617_v26 = vpack.c.bf16 %v958_v20, %v956_v18  ;;  %v960_v29 = vpop.eup %959  ;;  %v568_v32 = vunpack.c.l.bf16 %v558_v50  ;;  %v569_v33 = vunpack.c.h.bf16 %v558_v50 }
 0x357   : > { %v962_v30 = vpop.eup %961 }
 0x358   : > { %v616_v35 = vpack.c.bf16 %v962_v30, %v960_v29  ;;  %v588_v36 = vmul.f32 1.442695, %v568_v32  ;;  %v964_v54 = vpop.eup %963 }
 0x359   : > { %v515_v13 = vpop.xlane.xlu2 %514 }
 0x35a   : > { %v543_v45 = vsub.f32 %v1253_v44, %v515_v13  ;;  %v590_v44 = vmul.f32 1.442695, %v569_v33 }
 0x35c   : > { %634 = vmatpush.bf16.xpose.msrb.mxu0 %v618_v16  ;;  %874 = vmatpush.bf16.xpose.msra.mxu2 %v618_v16  ;;  %v557_v37 = vpack.c.bf16 %v543_v45, %v542_v46 }
 0x35e   : > { %v566_v56 = vunpack.c.l.bf16 %v557_v37  ;;  %v567_v59 = vunpack.c.h.bf16 %v557_v37 }
 0x360   : > { %v584_v6 = vmul.f32 1.442695, %v566_v56  ;;  %v586_v63 = vmul.f32 1.442695, %v567_v59 }
 0x361   : > { %v511_v23 = vpop.xlane.xlu2 %510 }
 0x362   : > { %v541_v57 = vsub.f32 %v1248_v42, %v511_v23 }
 0x364   : > { %635 = vmatpush.bf16.xpose.msrb.mxu0 %v617_v26  ;;  %875 = vmatpush.bf16.xpose.msra.mxu2 %v617_v26  ;;  %v556_v51 = vpack.c.bf16 %v541_v57, %v540_v9  ;;  %v622_v26 = vld [vmem:[#allocation5 + $0x8] sm:$0x1] }
 0x365   : > { %v628_v2 = vunpack.c.l.b16 %v622_v26 }
 0x366   : > { %v564_v10 = vunpack.c.l.bf16 %v556_v51  ;;  %v565_v11 = vunpack.c.h.bf16 %v556_v51 }
 0x367   : > { %v630_v27 = vpack.c.b16 %v628_v2, %v628_v2 }
 0x368   : > { %v580_v7 = vmul.f32 1.442695, %v564_v10  ;;  %v582_v49 = vmul.f32 1.442695, %v565_v11 }
 0x369   : > { %v259_v34 = vpop.permute.xlu2 %258 }
 0x36a   : > { %v283_v5 = vadd.f32 %v1311_v24, %v259_v34  ;;  %v966_v24 = vpop.eup %965 }
 0x36b   : > { %v615_v60 = vpack.c.bf16 %v966_v24, %v964_v54 }
 0x36c   : > { %v306_v38 = vmax.f32 %v283_v5, 0.0  ;;  %v846_v39 = vmul.f32 -1.442695, %v283_v5  ;;  %636 = vmatpush.bf16.xpose.msrb.mxu0 %v616_v35  ;;  %876 = vmatpush.bf16.xpose.msra.mxu2 %v616_v35  ;;  %v1338_v40 = vsel %vm288_vm1, %v283_v5, -1e+30 }
 0x36d   : > { %v331_v53 = vsel %vm330_vm10, %v1338_v40, -inf }
 0x36e   : > { %v1344_v43 = vsel %vm288_vm1, %v306_v38, 0.0  ;;  %967 = vpow2.f32 %v846_v39  ;;  %332 = vmax.xlane.f32.xlu0 %v331_v53  ;;  %vm402_vm1 = vcmask 7172  }
 0x36f   : > { %v370_v55 = vpack.c.bf16 %v1344_v43, %v1344_v43  ;;  %969 = vpow2.f32 %v588_v36 }
 0x370   : > { %971 = vpow2.f32 %v590_v44 }
 0x371   : > { %v382_v52 = vrot.slane %v370_v55, 6 }
 0x373   : > { %v383_v3 = vsel %vm1314_vm9, %v381_v58, %v382_v52 }
 0x374   : > { %v968_v4 = vpop.eup %967  ;;  %387 = vst [vmem:[#allocation5 + $0x4] sm:$0xf] %v383_v3  ;;  %637 = vmatpush.bf16.xpose.msrb.mxu0 %v615_v60  ;;  %877 = vmatpush.bf16.xpose.msra.mxu2 %v615_v60  ;;  %v398_v60 = vstv %s397_s13 }
 0x375   : > { %v313_v42 = vadd.f32 1.0, %v968_v4  ;;  %v970_v8 = vpop.eup %969 }
 0x376   : > { %v972_v28 = vpop.eup %971 }
 0x377   : > { %973 = vrcp.f32 %v313_v42  ;;  %v614_v41 = vpack.c.bf16 %v972_v28, %v970_v8  ;;  %v325_v47 = vand.u32 2147483648, %v313_v42  ;;  %v323_v17 = vand.u32 2147483647, %v313_v42 }
 0x378   : > { %975 = vpow2.f32 %v584_v6  ;;  %vm319_vm12 = vweird.f32 %v313_v42 }
 0x379   : > { %977 = vpow2.f32 %v586_v63  ;;  %v326_v12 = vor.u32 1.1754944e-38, %v325_v47  ;;  %vm324_vm14 = vcmp.eq.f32.partialorder %v323_v17, 8.507059e+37 }
 0x37a   : > { %979 = vpow2.f32 %v580_v7 }
 0x37b   : > { %981 = vpow2.f32 %v582_v49  ;;  %v869_v29 = vld [vmem:[#allocation5] sm:$0xff] }
 0x37c   : > { %638 = vmatpush.bf16.xpose.msrb.mxu0 %v614_v41  ;;  %878 = vmatpush.bf16.xpose.msra.mxu2 %v614_v41 }
 0x37d   : > { %v974_v25 = vpop.eup %973 }
 0x37e   : > { %v976_v62 = vpop.eup %975  ;;  %v315_v13 = vmul.f32 %v974_v25, %v313_v42  ;;  %vm320_vm11 = vweird.f32 %v974_v25 }
 0x37f   : > { %v978_v15 = vpop.eup %977  ;;  %vm321_vm13 = vmor %vm319_vm12, %vm320_vm11 }
 0x380   : > { %v316_v16 = vsub.f32 1.0, %v315_v13  ;;  %v613_v18 = vpack.c.bf16 %v978_v15, %v976_v62  ;;  %v980_v21 = vpop.eup %979 }
 0x381   : > { %v982_v22 = vpop.eup %981 }
 0x382   : > { %v317_v61 = vmul.f32 %v974_v25, %v316_v16  ;;  %v612_v50 = vpack.c.bf16 %v982_v22, %v980_v21 }
 0x384   : > { %v318_v20 = vadd.f32 %v974_v25, %v317_v61  ;;  %639 = vmatpush.bf16.xpose.msrb.mxu0 %v613_v18  ;;  %879 = vmatpush.bf16.xpose.msra.mxu2 %v613_v18 }
 0x386   : > { %v322_v48 = vsel %vm321_vm13, %v974_v25, %v318_v20 }
 0x387   : > { %v327_v23 = vsel %vm324_vm14, %v326_v12, %v322_v48 }
 0x388   : > { %396 = vst [vmem:[#allocation6 - $0x4] sm:$0x10] %v327_v23 }
 0x38c   : > { %640 = vmatpush.bf16.xpose.msrb.mxu0 %v612_v50  ;;  %880 = vmatpush.bf16.xpose.msra.mxu2 %v612_v50 }
 0x38f   : > { %v652_v44 = vld [vmem:[#allocation6] sm:$0x1] }
 0x393   : > { %641 = vmatmul.bf16.vlgmr.msrb.gmra.mxu0 %v869_v29  ;;  %646 = vmatmul.bf16.vlgmr.msra.gmra.mxu2 %v630_v27 }
 0x3e1   : > { %v333_v30 = vpop.xlane.xlu0 %332 }
 0x3e2   : > { %v334_v31 = vsub.f32 %v1338_v40, %v333_v30 }
 0x3e4   : > { %v335_v32 = vmul.f32 1.442695, %v334_v31 }
 0x3e6   : > { %983 = vpow2.f32 %v335_v32 }
 0x3ec   : > { %v984_v45 = vpop.eup %983 }
 0x3ed   : > { %v351_v33 = vsel %vm330_vm10, %v984_v45, 0.0  ;;  %v337_v34 = vperm.slane %v984_v45, 5 }
 0x3ee   : > { %352 = vadd.xlane.f32.xlu2 %v351_v33 }
 0x3ef   : > { %v338_v46 = vmul.f32 %v337_v34, %v1301_v14  ;;  %v340_v35 = vmul.f32 %v337_v34, %v1344_v43  ;;  %v339_v37 = vmul.f32 %v337_v34, %v1307_v19 }
 0x3f1   : > { %v342_v5 = vsel %vm341_vm15, %v338_v46, 0.0  ;;  %v348_v36 = vsel %vm347_vm0, %v340_v35, 0.0 }
 0x3f2   : > { %343 = vadd.xlane.f32.xlu0 %v342_v5 }
 0x3f6   : > { %349 = vadd.xlane.f32.xlu2 %v348_v36 }
 0x3fa   : > { %345 = vadd.xlane.f32.xlu0 %v339_v37 }
 0x410   : > { %v642_v39 = vpop.f32.mrf.mxu0 }
 0x416   : > { %v647_v38 = vpop.f32.mrf.mxu2 }
 0x417   : > { %985 = vrcp.f32 %v647_v38 }
 0x418   : > { %v644_v24 = vpop.f32.mrf.mxu0 }
 0x41d   : > { %v986_v40 = vpop.eup %985 }
 0x41e   : > { %v654_v53 = vmul.f32 %v986_v40, %v652_v44  ;;  %v649_v54 = vpop.f32.mrf.mxu2 }
 0x420   : > { %v656_v14 = vperm.slane %v654_v53, 0 }
 0x422   : > { %v659_v55 = vmul.f32 %v656_v14, %v644_v24  ;;  %v658_v43 = vmul.f32 %v656_v14, %v642_v39 }
 0x424   : > { %686 = vst [vmem:[%s1209_s15 + $0x8] sm:$0xff] %v659_v55 }
 0x425   : > { %685 = vst [vmem:[%s1209_s15] sm:$0xff] %v658_v43 }
 0x461   : > { %v353_v56 = vpop.xlane.xlu2 %352 }
 0x462   : > { %987 = vrcp.f32 %v353_v56 }
 0x465   : > { %v344_v57 = vpop.xlane.xlu0 %343 }
 0x468   : > { %v988_v58 = vpop.eup %987 }
 0x469   : > { %v355_v19 = vperm.slane %v988_v58, 5  ;;  %v350_v59 = vpop.xlane.xlu2 %349 }
 0x46b   : > { %v356_v52 = vmul.f32 %v355_v19, %v344_v57  ;;  %v358_v9 = vmul.f32 %v355_v19, %v350_v59 }
 0x46d   : > { %v399_v3 = vmul.f32 %v398_v60, %v356_v52  ;;  %v401_v4 = vmul.f32 %v398_v60, %v358_v9  ;;  %v346_v6 = vpop.xlane.xlu0 %345 }
 0x46e   : > { %v357_v51 = vmul.f32 %v355_v19, %v346_v6 }
 0x46f   : > { %403 = vst.msk [vmem:[#allocation7 - $0x4] sm:$0xf0] %vm402_vm1, %v399_v3 }
 0x470   : > { %407 = vst.msk [vmem:[#allocation7 + $0xc] sm:$0xf] %vm406_vm2, %v401_v4  ;;  %v400_v63 = vmul.f32 %v398_v60, %v357_v51 }
 0x472   : > { %405 = vst.msk [vmem:[#allocation7 + $0x4] sm:$0xff] %vm404_vm3, %v400_v63 }
 0x473   : > { %1016 = shalt.err (!%p1013_p3)
}
 0x474   : > { %s1105_s15 = smov 128   ;;  %s1106_s16 = smov 8   ;;  %v666_v28 = vmul.f32 %v659_v55, %v398_v60  ;;  %v665_v7 = vmul.f32 %v658_v43, %v398_v60 }
 0x475   : > { %882 = dma.vmem_to_hbm [thread:$0]  (%p1178_p4), %s725_s19, 256, %s727_s23, %s693_s0, %s1105_s15, %s1105_s15, %s1106_s16  }
 0x476   : > { %s705_s26 = scalar_lea.hbm %s1429_s4, %s1196_s9  ;;  %s706_s19 = sshll.u32 %s1207_s14, 4  ;;  %s707_s19 = int_to_ptr.vmem [resolvable:$true] %s706_s19 }
 0x477   : > { %s708_s23 = sshll.u32 %s705_s26, 4  ;;  %s688_s0 = scalar_lea.sflag [#allocation11], %s1194_s8  ;;  %s709_s23 = int_to_ptr.hbm [resolvable:$true] %s708_s23 }
 0x478   : > { %s1031_s28 = sshra.s32 %s709_s23, 4  ;;  %s1037_s11 = scalar_lea.hbm %s1429_s4, 32  ;;  %s1032_s28 = int_to_ptr.hbm [resolvable:$true] %s1031_s28 }
 0x479   : > { %v667_v42 = vld [vmem:[#allocation7] sm:$0xff]  ;;  %v668_v8 = vld [vmem:[#allocation7 + $0x8] sm:$0xff]  ;;  %s1033_s30 = scalar_lea.hbm %s1032_s28, 16  ;;  %p1038_p9 = scmp.lt.s32.totalorder %s1032_s28, %s1429_s4 }
 0x47a   : > { %671 = vperm.xlu0 %945, %v667_v42   ;;  %676 = vperm.xlu2 %946, %v668_v8   ;;  %p1034_p5 = scmp.ne.s32.totalorder %s1032_s28, %s1033_s30  ;;  %p1039_p10 = scmp.lt.s32.totalorder %s1037_s11, %s1033_s30 }
 0x47c   : > { %p1035_p6 = pnand %p1034_p5, %p1178_p4  ;;  %p1040_p11 = por %p1039_p10, %p1038_p9 }
 0x47e   : > { %p1036_p7 = pneg %p1035_p6 }
 0x480   : > { %p1041_p12 = pnand %p1040_p11, %p1036_p7 }
 0x4d4   : > { %v677_v10 = vpop.permute.xlu2 %676 }
 0x4d5   : > { %v680_v11 = vadd.f32 %v677_v10, %v666_v28 }
 0x4d7   : > { %v682_v41 = vadd.f32 %v680_v11, %v1205_v1 }
 0x4d9   : > { %684 = vst [vmem:[%s1207_s14 + $0x8] sm:$0xff] %v682_v41 }
 0x4ec   : > { %v672_v25 = vpop.permute.xlu0 %671 }
 0x4ed   : > { %v679_v49 = vadd.f32 %v672_v25, %v665_v7 }
 0x4ef   : > { %v681_v62 = vadd.f32 %v679_v49, %v1203_v0 }
 0x4f1   : > { %683 = vst [vmem:[%s1207_s14] sm:$0xff] %v681_v62 }
 0x4f2   : > { %1044 = shalt.err (!%p1041_p12)
}
 0x4f3   : > { %881 = dma.vmem_to_hbm [thread:$0]  (%p1178_p4), %s707_s19, 256, %s709_s23, %s688_s0, %s1105_s15, %s1105_s15, %s1106_s16  }
 0x4f4 PF: > { %p892_p13 = scmp.ge.s32.totalorder %s1101_s25, 2  ;;  %s741_s8 = sand.u32 1, %s1081_s20  }
 0x4f5   : > { %s742_s14 = scalar_lea.sflag [#allocation11], %s741_s8 }
 0x4f6   : > { %p886_p0 = pnand %p892_p13, %p1185_p8 }
 0x4f8   : > { %p887_p1 = pneg %p886_p0 }
 0x4fa   : > { %1072 = dma.done.wait (%p887_p1), %s742_s14, 256  }
 0x4fb   : > { %1074 = vsyncadd (%p887_p1), %s742_s14, 4294967040  ;;  %s752_s17 = scalar_lea.sflag [#allocation13], %s741_s8 }
 0x4fc   : > { %1076 = dma.done.wait (%p887_p1), %s752_s17, 256  }
 0x4fd   : > { %1078 = vsyncadd (%p887_p1), %s752_s17, 4294967040  ;;  %s23_s25 = sadd.s32 1, %s1101_s25   ;;  %s1435_s20 = smov %s1085_s21 }
 0x4fe   : > { %p20_p2 = scmp.ge.s32.totalorder %s23_s25, 4   ;;  %s1436_s21 = smov %s1089_s22 }
 0x4ff   : > { %s1437_s22 = smov %s1191_s7  ;;  %s1438_s23 = smov %s1097_s24 }
 0x500   : > { %s1439_s24 = smov %s1441_s27  ;;  %22 = sbr.rel (!%p20_p2) target bundleno = 8 (0x8), region = 113 }
 0x505   :  { %758 = vsyncpa [#allocation11], 1 }
 0x506   :  { %760 = vsyncpa [#allocation11 + $0x1], 1 }
 0x507   :  { %761 = vsyncpa [#allocation13], 1 }
 0x508   :  { %763 = vsyncpa [#allocation13 + $0x1], 1 }
 0x509   :  { %764 = vsyncmov [#allocation8] }
 0x50c   :  { %s765_s29 = vpop.sfrf %764 }
 0x50d   :  { %p868_p4 = scmp.ne.s32.totalorder %s765_s29, 0 }
 0x50f   :  { %769 = shalt.err (%p868_p4)  }

</bundles_post_ra>
